<compile_context>
chip_gen: v6e
topology: v6e:2x2x1
jax: 0.10.0
libtpu: 0.0.40
codegen_flags: <defaults>
</compile_context>

<pallas_src>
import functools

import jax
import jax.numpy as jnp
from jax import lax
from jax.experimental import pallas as pl
from jax.experimental.pallas import tpu as pltpu


# ----------------------------------------------------------------------------
# Pallas kernels
# ----------------------------------------------------------------------------
def _softmax_rows(e, *, approx_recip):
    """Row-wise softmax of a (C, C) energy matrix (must be called in-kernel)."""
    p = jnp.exp(e - jnp.max(e, axis=-1, keepdims=True))
    denom = jnp.sum(p, axis=-1, keepdims=True)
    return p * pl.reciprocal(denom, approx=approx_recip)


def _cam_fused_kernel(x_ref, mu_ref, o_ref, *, matmul_dtype, approx_recip):
    """Whole image per grid step: y = mu * (softmax(v @ v^T) @ v) + v."""
    v = x_ref[0]                                           # (C, HWp) f32
    vm = v.astype(matmul_dtype)
    # energy = v @ v^T : contract over the lane (HW) axis directly on the MXU,
    # no explicit transpose of the large activation.
    energy = lax.dot_general(
        vm, vm,
        dimension_numbers=(((1,), (1,)), ((), ())),
        preferred_element_type=jnp.float32)                # (C, C) f32
    attn = _softmax_rows(energy, approx_recip=approx_recip)
    out = jnp.dot(attn.astype(matmul_dtype), vm,
                  preferred_element_type=jnp.float32)      # (C, HWp) f32
    o_ref[0] = (mu_ref[0] * out + v).astype(o_ref.dtype)


def _cam_energy_kernel(x_ref, attn_ref, *, matmul_dtype, approx_recip):
    """Accumulate energy = v @ v^T over HW tiles; softmax at the last tile."""
    k = pl.program_id(1)

    @pl.when(k == 0)
    def _init():
        attn_ref[...] = jnp.zeros_like(attn_ref)

    v = x_ref[0].astype(matmul_dtype)                      # (C, T)
    attn_ref[0] += lax.dot_general(
        v, v,
        dimension_numbers=(((1,), (1,)), ((), ())),
        preferred_element_type=jnp.float32)

    @pl.when(k == pl.num_programs(1) - 1)
    def _finalize():
        attn_ref[0] = _softmax_rows(attn_ref[0], approx_recip=approx_recip)


def _cam_apply_kernel(attn_ref, x_ref, mu_ref, o_ref, *, matmul_dtype):
    """Per HW tile: out = mu * (attn @ v) + v."""
    v = x_ref[0]                                           # (C, T) f32
    out = jnp.dot(attn_ref[0].astype(matmul_dtype), v.astype(matmul_dtype),
                  preferred_element_type=jnp.float32)      # (C, T) f32 accum
    o_ref[0] = (mu_ref[0] * out + v).astype(o_ref.dtype)


# ----------------------------------------------------------------------------
# Wrapper
# ----------------------------------------------------------------------------
def cam_forward(x, para_mu, *, matmul_dtype=jnp.float32, max_hw_tile=2048,
                fused_vmem_budget=40 * 1024 * 1024):
    """x: (N, C, H, W) float32, para_mu: scalar / (1,) -> (N, C, H, W) float32."""
    N, C, H, W = x.shape
    HW = H * W

    # Lane-dense spatial axis: pad HW to a multiple of 128 (zero padding is
    # exact: zero columns contribute nothing to energy and the padded output
    # columns are sliced off).
    hw_pad = ((HW + 127) // 128) * 128
    v = x.reshape(N, C, HW).astype(jnp.float32)
    if hw_pad != HW:
        v = jnp.pad(v, ((0, 0), (0, 0), (0, hw_pad - HW)))

    mu = jnp.asarray(para_mu, jnp.float32).reshape(1)
    use_approx = (matmul_dtype == jnp.bfloat16)
    smem_spec = pl.BlockSpec(memory_space=pltpu.MemorySpace.SMEM)
    cparams = dict(vmem_limit_bytes=48 * 1024 * 1024)

    # Fused fast path if the per-image slab (double-buffered in/out + temps)
    # comfortably fits in VMEM on all chip generations.
    slab_bytes = C * hw_pad * 4
    fused_est = 6 * slab_bytes + 8 * C * C * 4 + (1 << 20)

    if fused_est <= fused_vmem_budget:
        y = pl.pallas_call(
            functools.partial(_cam_fused_kernel,
                              matmul_dtype=matmul_dtype,
                              approx_recip=use_approx),
            out_shape=jax.ShapeDtypeStruct((N, C, hw_pad), jnp.float32),
            grid_spec=pltpu.PrefetchScalarGridSpec(
                num_scalar_prefetch=0, grid=(N,),
                in_specs=[pl.BlockSpec((1, C, hw_pad), lambda n: (n, 0, 0)),
                          smem_spec],
                out_specs=pl.BlockSpec((1, C, hw_pad), lambda n: (n, 0, 0))),
            compiler_params=pltpu.CompilerParams(
                dimension_semantics=("parallel",), **cparams),
        )(v, mu)
        return y[:, :, :HW].reshape(N, C, H, W)

    # ---- tiled fallback -------------------------------------------------------
    # Largest multiple of 128 <= max_hw_tile that divides hw_pad (bounds VMEM
    # per grid step independent of image size; 128 always divides hw_pad).
    t = max(128, min(hw_pad, (max_hw_tile // 128) * 128))
    while hw_pad % t:
        t -= 128
    K = hw_pad // t

    # pass 1: attention = softmax(v @ v^T), energy accumulated over HW tiles.
    attn = pl.pallas_call(
        functools.partial(_cam_energy_kernel,
                          matmul_dtype=matmul_dtype, approx_recip=use_approx),
        out_shape=jax.ShapeDtypeStruct((N, C, C), jnp.float32),
        grid_spec=pltpu.PrefetchScalarGridSpec(
            num_scalar_prefetch=0, grid=(N, K),
            in_specs=[pl.BlockSpec((1, C, t), lambda n, k: (n, 0, k))],
            out_specs=pl.BlockSpec((1, C, C), lambda n, k: (n, 0, 0))),
        compiler_params=pltpu.CompilerParams(
            dimension_semantics=("parallel", "arbitrary"), **cparams),
    )(v)

    # pass 2: y = mu * (attn @ v) + v, tile by tile.
    y = pl.pallas_call(
        functools.partial(_cam_apply_kernel, matmul_dtype=matmul_dtype),
        out_shape=jax.ShapeDtypeStruct((N, C, hw_pad), jnp.float32),
        grid_spec=pltpu.PrefetchScalarGridSpec(
            num_scalar_prefetch=0, grid=(N, K),
            in_specs=[pl.BlockSpec((1, C, C), lambda n, k: (n, 0, 0)),
                      pl.BlockSpec((1, C, t), lambda n, k: (n, 0, k)),
                      smem_spec],
            out_specs=pl.BlockSpec((1, C, t), lambda n, k: (n, 0, k))),
        compiler_params=pltpu.CompilerParams(
            dimension_semantics=("parallel", "parallel"), **cparams),
    )(attn, v, mu)

    return y[:, :, :HW].reshape(N, C, H, W)


# ----------------------------------------------------------------------------
# Pure-JAX reference (mirrors the PyTorch forward exactly)
# ----------------------------------------------------------------------------
def cam_reference(x, para_mu):
    N, C, H, W = x.shape
    v = x.reshape(N, C, H * W)
    energy = jnp.einsum("ncl,nml->ncm", v, v, precision=lax.Precision.HIGHEST)
    # energy_new in the PyTorch source is computed but never used -> omitted.
    attn = jax.nn.softmax(energy, axis=-1)
    out = jnp.einsum("ncm,nml->ncl", attn, v, precision=lax.Precision.HIGHEST)
    out = out.reshape(N, C, H, W)
    return para_mu * out + x


# ----------------------------------------------------------------------------
if __name__ == "__main__":
    key = jax.random.PRNGKey(0)
    N, C, H, W = 2, 4, 16, 16
    # Scale keeps softmax(energy) non-degenerate so the attention path is
    # actually exercised numerically.
    x = 0.1 * jax.random.normal(key, (N, C, H, W), dtype=jnp.float32)

    mu_init = jnp.zeros((1,), jnp.float32)         # CAM.__init__: torch.zeros(1)
    mu_trained = jnp.full((1,), 0.7, jnp.float32)  # nonzero mu: attention branch live

    # (label, mu, matmul operand dtype, extra kwargs, tolerance)
    checks = [
        ("fused f32 / mu=0", mu_init, jnp.float32, {}, 1e-3),
        ("fused f32 / mu=0.7", mu_trained, jnp.float32, {}, 1e-3),
        ("tiled f32 / mu=0.7 / 2 HW tiles", mu_trained, jnp.float32,
         dict(fused_vmem_budget=0, max_hw_tile=128), 1e-3),
        ("fused bf16 / mu=0.7", mu_trained, jnp.bfloat16, {}, 2e-2),
    ]
    for name, mu, dt, kwargs, tol in checks:
        out = jax.block_until_ready(
            cam_forward(x, mu, matmul_dtype=dt, **kwargs))
        ref = jax.block_until_ready(cam_reference(x, mu))
        assert out.shape == (N, C, H, W), (name, out.shape)
        err = float(jnp.max(jnp.abs(out - ref)))
        assert err < tol, (name, err)

    print("KERNEL_OK")
</pallas_src>

<mosaic_0001>
module attributes {stable_mosaic.version = 11 : i64} {
  func.func @_cam_fused_kernel(%arg0: i32, %arg1: memref<1x4x256xf32, #tpu.memory_space<vmem>>, %arg2: memref<1xf32, #tpu.memory_space<smem>>, %arg3: memref<1x4x256xf32, #tpu.memory_space<vmem>>) attributes {dimension_semantics = [#tpu.dimension_semantics<parallel>], iteration_bounds = array<i64: 2>, scalar_prefetch = 0 : i64, scratch_operands = 0 : i64, tpu.core_type = #tpu.core_type<tc>, window_params = [{transform_indices = @transform_0, window_bounds = array<i64: 1, 4, 256>}, {transform_indices = @transform_1, window_bounds = array<i64: 1>}, {transform_indices = @transform_2, window_bounds = array<i64: 1, 4, 256>}]} {
    %c0 = arith.constant 0 : index
    %c0_0 = arith.constant 0 : index
    %c0_1 = arith.constant 0 : index
    %0 = vector.load %arg1[%c0, %c0_0, %c0_1] : memref<1x4x256xf32, #tpu.memory_space<vmem>>, vector<1x4x256xf32>
    %1 = vector.shape_cast %0 : vector<1x4x256xf32> to vector<4x256xf32>
    %cst = arith.constant dense<0.000000e+00> : vector<4x4xf32>
    %2 = tpu.matmul %1, %1, %cst {dimension_numbers = #tpu.dot_dimension_numbers<[1], [1], [0], [0], [0, 0, 1, 0], [], []>} : vector<4x256xf32>, vector<4x256xf32>, vector<4x4xf32> -> vector<4x4xf32>
    %cst_2 = arith.constant dense<0xFF800000> : vector<4xf32>
    %3 = vector.multi_reduction <maximumf>, %2, %cst_2 [1] : vector<4x4xf32> to vector<4xf32>
    %4 = vector.shape_cast %3 : vector<4xf32> to vector<4x1xf32>
    %5 = vector.broadcast %4 : vector<4x1xf32> to vector<4x4xf32>
    %6 = arith.subf %2, %5 : vector<4x4xf32>
    %7 = math.exp %6 : vector<4x4xf32>
    %cst_3 = arith.constant dense<0.000000e+00> : vector<4xf32>
    %8 = vector.multi_reduction <add>, %7, %cst_3 [1] : vector<4x4xf32> to vector<4xf32>
    %9 = vector.shape_cast %8 : vector<4xf32> to vector<4x1xf32>
    %10 = tpu.reciprocal %9 : vector<4x1xf32> -> vector<4x1xf32>
    %11 = vector.broadcast %10 : vector<4x1xf32> to vector<4x4xf32>
    %12 = arith.mulf %7, %11 : vector<4x4xf32>
    %cst_4 = arith.constant dense<0.000000e+00> : vector<4x256xf32>
    %13 = tpu.matmul %12, %1, %cst_4 {dimension_numbers = #tpu.dot_dimension_numbers<[1], [0], [0], [1], [0, 0, 1, 1], [], []>} : vector<4x4xf32>, vector<4x256xf32>, vector<4x256xf32> -> vector<4x256xf32>
    %c0_5 = arith.constant 0 : index
    %14 = memref.load %arg2[%c0_5] : memref<1xf32, #tpu.memory_space<smem>>
    %15 = vector.broadcast %14 : f32 to vector<4x256xf32>
    %16 = arith.mulf %15, %13 : vector<4x256xf32>
    %17 = arith.addf %16, %1 : vector<4x256xf32>
    %c0_6 = arith.constant 0 : index
    %c0_7 = arith.constant 0 : index
    %c0_8 = arith.constant 0 : index
    %18 = vector.load %arg3[%c0_6, %c0_7, %c0_8] : memref<1x4x256xf32, #tpu.memory_space<vmem>>, vector<1x4x256xf32>
    %19 = vector.shape_cast %18 : vector<1x4x256xf32> to vector<4x256xf32>
    %20 = vector.shape_cast %17 : vector<4x256xf32> to vector<1x4x256xf32>
    tpu.vector_store %arg3[%c0_6, %c0_7, %c0_8], %20 {strides = array<i32>} : memref<1x4x256xf32, #tpu.memory_space<vmem>>, vector<1x4x256xf32>,
    return
  }
  func.func @transform_0(%arg0: i32) -> (i32, i32, i32) {
    %c0_i32 = arith.constant 0 : i32
    %c0_i32_0 = arith.constant 0 : i32
    %c0_i32_1 = arith.constant 0 : i32
    return %arg0, %c0_i32, %c0_i32_0 : i32, i32, i32
  }
  func.func @transform_1(%arg0: i32) -> i32 {
    %c0_i32 = arith.constant 0 : i32
    %c0_i32_0 = arith.constant 0 : i32
    return %c0_i32 : i32
  }
  func.func @transform_2(%arg0: i32) -> (i32, i32, i32) {
    %c0_i32 = arith.constant 0 : i32
    %c0_i32_0 = arith.constant 0 : i32
    %c0_i32_1 = arith.constant 0 : i32
    return %arg0, %c0_i32, %c0_i32_0 : i32, i32, i32
  }
}

</mosaic_0001>

<bundles_post_ra>
// kernel: tpu_custom_call.1
= control target key start
LH: loop header
LB: loop body
LE: loop exit
PB: predicated region body
PF: predicated region fallthrough
CT: control target
= control target key end

     0   :  { %s754_s0 = inlined_call_operand.hbm [shape: f32[2,4,256], index: 0, kind: input, shape index: {}]   ;;  %s755_s1 = inlined_call_operand.<no memory space> [shape: f32[1], index: 1, kind: input, shape index: {}]   ;;  %s756_s2 = inlined_call_operand.hbm [shape: f32[2,4,256], index: 2, kind: output, shape index: {}]  }
   0x1   :  { %7 = sst [smem:[#allocation2]] %s755_s1 }
   0x2   :  { %8 = vsyncpa [#allocation4], 0 }
   0x3   :  { %10 = vsyncpa [#allocation4 + $0x1], 0 }
   0x4   :  { %11 = vsyncpa [#allocation5], 0 }
   0x5   :  { %13 = vsyncpa [#allocation5 + $0x1], 0  ;;  %s609_s11 = smov 0   ;;  %s611_s12 = smov 0  }
   0x6   :  { %s613_s13 = smov 0   ;;  %s615_s14 = smov 0  }
   0x7 LB: > { %s630_s1 = sadd.s32 4294967295, %s586_s14   ;;  %s423_s15 = sadd.s32 4294967294, %s586_s14   ;;  %s586_s14 = sphi %s615_s14, %s773_s14   ;;  %s582_s13 = sphi %s613_s13, %s772_s13   ;;  %s578_s12 = sphi %s611_s12, %s771_s12   ;;  %s574_s11 = sphi %s609_s11, %s770_s11  }
   0x8   : > { %s634_s16 = sadd.s32 1, %s586_s14   ;;  %s26_s17 = sadd.s32 1, %s582_s13 }
   0x9   : > { %s23_s18 = ssub.s32 %s586_s14, %s634_s16  ;;  %p33_p0 = scmp.ne.s32.totalorder %s582_s13, %s578_s12 }
   0xa   : > { %p24_p1 = scmp.eq.s32.totalorder %s23_s18, 0  ;;  %p34_p2 = scmp.eq.s32.totalorder %s586_s14, 0 }
   0xb   : > { %p39_p3 = scmp.ne.s32.totalorder %s578_s12, %s574_s11  ;;  %p40_p4 = scmp.eq.s32.totalorder %s630_s1, 0 }
   0xc   : > { %s646_s19 = scalar_select %p24_p1, %s582_s13, %s26_s17  }
   0xd   : > { %p648_p5 = por %p34_p2, %p33_p0  ;;  %p652_p6 = por %p40_p4, %p39_p3 }
   0xe   : > { %p84_p7 = scmp.eq.s32.totalorder %s630_s1, 1  ;;  %p90_p8 = scmp.eq.s32.totalorder %s423_s15, 1 }
   0xf   : > { %s760_s21 = scalar_select %p652_p6, 1, 0 }
  0x10   : > { %p454_p10 = scmp.lt.s32.totalorder %s586_s14, 2  ;;  %p659_p11 = por %p84_p7, %p33_p0 }
  0x11   : > { %p663_p12 = por %p90_p8, %p39_p3  ;;  %s113_s24 = sand.u32 1, %s582_s13  }
  0x12   : > { %s761_s22 = scalar_select %p659_p11, 1, 0 }
  0x13   : > { %s762_s23 = scalar_select %p663_p12, 1, 0 }
  0x14   : > { %s440_s25 = sshll.u32 %s586_s14, 7  ;;  %s426_s26 = sshll.u32 %s113_s24, 3 }
  0x15   : > { %s672_s29 = scalar_lea.hbm %s754_s0, %s440_s25  ;;  %s117_s30 = scalar_lea.vmem [#allocation3], %s426_s26 }
  0x16   : > { %s125_s3 = sshll.u32 %s117_s30, 4  ;;  %p676_p13 = pnand %p454_p10, %p648_p5  ;;  %s680_s3 = int_to_ptr.vmem [resolvable:$true] %s125_s3 }
  0x17   : > { %s114_s5 = scalar_lea.sflag [#allocation4], %s113_s24  ;;  %s494_s6 = scalar_lea.hbm %s672_s29, 128 }
  0x18   : > { %p495_p2 = scmp.ne.s32.totalorder %s672_s29, %s494_s6  ;;  %p496_p3 = pneg %p676_p13 }
  0x19   : > { %s499_s9 = scalar_lea.hbm %s754_s0, 256  ;;  %p500_p5 = scmp.lt.s32.totalorder %s672_s29, %s754_s0 }
  0x1a   : > { %p497_p4 = pnand %p496_p3, %p495_p2  ;;  %p501_p8 = scmp.lt.s32.totalorder %s499_s9, %s494_s6 }
  0x1c   : > { %p498_p7 = pneg %p497_p4  ;;  %p502_p10 = por %p501_p8, %p500_p5 }
  0x1e   : > { %p503_p9 = pnand %p502_p10, %p498_p7 }
  0x20   : > { %506 = shalt.err (!%p503_p9)
}
  0x21   : > { %s507_s17 = scalar_lea.vmem %s680_s3, 128  ;;  %s588_s18 = smov [#allocation3]  }
  0x22   : > { %p508_p0 = scmp.ne.s32.totalorder %s680_s3, %s507_s17  ;;  %s512_s20 = sshll.u32 %s588_s18, 4  ;;  %s513_s20 = int_to_ptr.vmem [resolvable:$false] %s512_s20 }
  0x23   : > { %s514_s24 = scalar_lea.vmem %s513_s20, 256  ;;  %p515_p4 = scmp.lt.s32.totalorder %s680_s3, %s513_s20 }
  0x24   : > { %p510_p1 = pnand %p508_p0, %p496_p3  ;;  %p516_p12 = scmp.lt.s32.totalorder %s514_s24, %s507_s17 }
  0x26   : > { %p511_p2 = pneg %p510_p1  ;;  %p517_p11 = por %p516_p12, %p515_p4 }
  0x28   : > { %p518_p6 = pnand %p517_p11, %p511_p2 }
  0x2a   : > { %521 = shalt.err (!%p518_p6)
}
  0x2b   : > { %449 = dma.hbm_to_vmem [thread:$0]  (!%p676_p13), %s672_s29, 128, %s680_s3, %s114_s5  }
  0x2c   : > { %p764_p9 = scmp.lt.s32.totalorder %s586_s14, 3  ;;  %p765_p7 = scmp.ge.s32.totalorder %s586_s14, 1 }
  0x2e   : > { %p131_p0 = pnand %p765_p7, %p764_p9 }
  0x2f   : > { %s707_s25 = sand.u32 (!%p131_p0), 1, %s578_s12   ;;  %p766_p6 = scmp.ne.s32.totalorder (!%p131_p0), %s760_s21, 0 }
  0x30   : > { %134 = sbr.rel (%p131_p0) target bundleno = 780 (0x30c), region = 28  ;;  %s430_s26 = sshll.u32 (!%p131_p0), %s707_s25, 3 }
  0x31   : > { %s137_s27 = scalar_lea.sflag (!%p131_p0), [#allocation4], %s707_s25  ;;  %s140_s28 = scalar_lea.vmem (!%p131_p0), [#allocation3], %s430_s26 }
  0x35   : > { %565 = dma.done.wait (%p766_p6), %s137_s27, 128  }
  0x36   : > { %567 = vsyncadd (%p766_p6), %s137_s27, 4294967168  ;;  %v161_v0 = vld [vmem:[%s140_s28] sm:$0xff]  ;;  %vm235_vm0 = vcmask 27648   ;;  %vm251_vm1 = vcmask 1043456   ;;  %v589_v10 = vmov 0.0   ;;  %vm247_vm2 = vcmask 31744  }
  0x37   : > { %v163_v1 = vcombine.high %v161_v0, %v161_v0  ;;  %320 = vmatprep.mubr.f32.mxu1 %v589_v10  ;;  %s327_s21 = sld [smem:[#allocation2]]  ;;  %s441_s29 = sshll.u32 %s630_s1, 7 }
  0x38   : > { %s160_s30 = scalar_lea.vmem [#allocation6], %s430_s26  ;;  %s351_s6 = scalar_lea.hbm %s756_s2, %s441_s29 }
  0x39   : > { %195 = vmatprep.subr.mxu0 %v163_v1  ;;  %229 = vmatprep.mubr.f32.mxu0 %v163_v1  ;;  %s353_s3 = sshll.u32 %s160_s30, 4  ;;  %s339_s7 = scalar_lea.sflag [#allocation5], %s707_s25  ;;  %s354_s3 = int_to_ptr.vmem [resolvable:$true] %s353_s3 }
  0x3a   : > { %196 = vmatpush1.xpose.msra.mxu0 %v161_v0  ;;  %432 = vmatprep.subr.msk.mxu1 %vm251_vm1, %v163_v1  ;;  %s522_s8 = scalar_lea.vmem %s354_s3, 128  ;;  %p767_p12 = scmp.ne.s32.totalorder %s761_s22, 0 }
  0x3b   : > { %433 = vmatpush1.msk.msra.mxu1 %vm251_vm1, %v161_v0  ;;  %p523_p11 = scmp.ne.s32.totalorder %s354_s3, %s522_s8  ;;  %s590_s9 = smov [#allocation6]  }
  0x3c   : > { %s526_s1 = sshll.u32 %s590_s9, 4  ;;  %s527_s1 = int_to_ptr.vmem [resolvable:$false] %s526_s1 }
  0x3d   : > { %230 = vmatmul.mubr.f32.vlgmr.msra.gmra.mxu0 %v161_v0  ;;  %v328_v14 = vstv %s327_s21  ;;  %p524_p13 = pnand %p523_p11, %p767_p12  ;;  %s528_s10 = scalar_lea.vmem %s527_s1, 256 }
  0x3e   : > { %p529_p3 = scmp.lt.s32.totalorder %s354_s3, %s527_s1  ;;  %p530_p5 = scmp.lt.s32.totalorder %s528_s10, %s522_s8 }
  0x3f   : > { %p525_p1 = pneg %p524_p13 }
  0x40   : > { %p531_p8 = por %p530_p5, %p529_p3 }
  0x42   : > { %p532_p10 = pnand %p531_p8, %p525_p1 }
  0xfd   : > { %v231_v2 = vpop.f32.mrf.mxu0 }
  0xfe   : > { %v236_v3 = vsel %vm235_vm0, %v231_v2, -inf }
  0xff   : > { %237 = vmax.xlane.f32.xlu0 %v236_v3  ;;  %v233_v4 = vpop.f32.mrf.mxu0 }
 0x188   : > { %v238_v5 = vpop.xlane.xlu0 %237 }
 0x189   : > { %v239_v6 = vsub.f32 %v231_v2, %v238_v5 }
 0x18b   : > { %v240_v7 = vmul.f32 1.442695, %v239_v6 }
 0x18d   : > { %490 = vpow2.f32 %v240_v7 }
 0x19a   : > { %v491_v8 = vpop.eup %490 }
 0x19b   : > { %v242_v9 = vsel %vm235_vm0, %v491_v8, 0.0 }
 0x19c   : > { %243 = vadd.xlane.f32.xlu0 %v242_v9 }
 0x225   : > { %v244_v11 = vpop.xlane.xlu0 %243 }
 0x226   : > { %492 = vrcp.f32 %v244_v11 }
 0x233   : > { %v493_v12 = vpop.eup %492 }
 0x234   : > { %v246_v13 = vmul.f32 %v493_v12, %v491_v8 }
 0x236   : > { %434 = vmatmul.mubr.msk.f32.vlgmr.msra.gmra.mxu1 %vm247_vm2, %v246_v13 }
 0x2f6   : > { %v322_v15 = vpop.f32.mrf.mxu1 }
 0x2f7   : > { %v329_v16 = vmul.f32 %v328_v14, %v322_v15 }
 0x2f8   : > { %v324_v17 = vpop.f32.mrf.mxu1 }
 0x2f9   : > { %v330_v18 = vmul.f32 %v328_v14, %v324_v17  ;;  %v331_v19 = vadd.f32 %v329_v16, %v161_v0 }
 0x2fb   : > { %v332_v20 = vadd.f32 %v330_v18, %v163_v1 }
 0x2fd   : > { %v335_v21 = vcombine.low %v331_v19, %v332_v20 }
 0x2ff   : > { %337 = vst [vmem:[%s160_s30] sm:$0xff] %v335_v21 }
 0x300   : > { %535 = shalt.err (!%p532_p10)
}
 0x301   : > { %s536_s15 = scalar_lea.hbm %s351_s6, 128  ;;  %s540_s20 = scalar_lea.hbm %s756_s2, 256 }
 0x302   : > { %p537_p2 = scmp.ne.s32.totalorder %s351_s6, %s536_s15  ;;  %p541_p7 = scmp.lt.s32.totalorder %s351_s6, %s756_s2 }
 0x303   : > { %p542_p0 = scmp.lt.s32.totalorder %s540_s20, %s536_s15 }
 0x304   : > { %p538_p4 = pnand %p537_p2, %p767_p12 }
 0x305   : > { %p543_p6 = por %p542_p0, %p541_p7 }
 0x306   : > { %p539_p9 = pneg %p538_p4 }
 0x308   : > { %p544_p11 = pnand %p543_p6, %p539_p9 }
 0x30a   : > { %547 = shalt.err (!%p544_p11)
}
 0x30b   : > { %444 = dma.vmem_to_hbm [thread:$0]  (%p767_p12), %s354_s3, 128, %s351_s6, %s339_s7  }
 0x30c PF: > { %s365_s26 = sand.u32 1, %s574_s11   ;;  %p768_p13 = scmp.ne.s32.totalorder %s762_s23, 0 }
 0x30d   : > { %p769_p1 = scmp.ge.s32.totalorder %s586_s14, 2  ;;  %s366_s27 = scalar_lea.sflag [#allocation5], %s365_s26 }
 0x30f   : > { %p451_p3 = pnand %p769_p1, %p768_p13 }
 0x311   : > { %p452_p5 = pneg %p451_p3 }
 0x313   : > { %569 = dma.done.wait (%p452_p5), %s366_s27, 128  }
 0x314   : > { %571 = vsyncadd (%p452_p5), %s366_s27, 4294967168  ;;  %p16_p8 = scmp.ge.s32.totalorder %s634_s16, 4   ;;  %s770_s11 = smov %s578_s12 }
 0x315   : > { %s771_s12 = smov %s582_s13  ;;  %s772_s13 = smov %s646_s19 }
 0x316   : > { %s773_s14 = smov %s634_s16  ;;  %18 = sbr.rel (!%p16_p8) target bundleno = 7 (0x7), region = 73 }
 0x31b   :  { %371 = vsyncpa [#allocation4], 1 }
 0x31c   :  { %373 = vsyncpa [#allocation4 + $0x1], 1 }
 0x31d   :  { %374 = vsyncpa [#allocation5], 1 }
 0x31e   :  { %376 = vsyncpa [#allocation5 + $0x1], 1 }

</bundles_post_ra>
